<compile_context>
chip_gen: v6e
topology: v6e:2x2x1
jax: 0.10.0
libtpu: 0.0.40
codegen_flags: <defaults>
</compile_context>

<pallas_src>
import functools

import jax
import jax.numpy as jnp
from jax.experimental import pallas as pl
from jax.experimental.pallas import tpu as pltpu


def _pick_row_tile(n_rows, vocab, itemsize):
    """Rows per grid step: target ~4 MiB per logp tile, multiple of 16 sublanes."""
    target_bytes = 4 * 1024 * 1024
    rt = target_bytes // max(1, vocab * itemsize)
    rt = max(16, min(2048, (rt // 16) * 16))
    # Don't make the tile (much) larger than the whole problem.
    rt = min(rt, max(16, ((n_rows + 15) // 16) * 16))
    return int(rt)


def _reward_criterion_kernel(logp_ref, tgt_ref, rwd_ref, out_ref, *,
                             n_rows, row_tile):
    """One grid step: per-row pick logp[target]*reward, reduce rows -> (1,1,V) partial.

    logp_ref : (ROW_TILE, V)   input dtype  log-probabilities tile
    tgt_ref  : (ROW_TILE, 1)   i32          target class index per row
    rwd_ref  : (ROW_TILE, 1)   f32          reward per row
    out_ref  : (1, 1, V)       f32          per-tile partial sum (lane-dense)
    """
    i = pl.program_id(0)

    logp = logp_ref[...].astype(jnp.float32)              # (RT, V)
    tgt = tgt_ref[...]                                     # (RT, 1) i32
    rwd = rwd_ref[...]                                     # (RT, 1) f32

    col = jax.lax.broadcasted_iota(jnp.int32, logp.shape, 1)   # lane index
    row = jax.lax.broadcasted_iota(jnp.int32, logp.shape, 0)   # row-in-tile index

    # Mask the ragged last tile: rows beyond n_rows (garbage data from the
    # overhanging block) must not be selected.  Select BEFORE any product of
    # garbage values can reach the sum (jnp.where discards the untaken branch).
    valid = (row + i * row_tile) < n_rows                      # (RT, V) bool
    sel = (col == tgt) & valid                                 # (RT, V) bool
    contrib = jnp.where(sel, logp * rwd, 0.0)                  # (RT, V) f32

    # Only a sublane reduce per tile; cross-lane reduce + negate happen in the
    # wrapper over the small (num_tiles, 1, V) partials array.
    out_ref[...] = jnp.sum(contrib, axis=0, keepdims=True)[None]   # (1, 1, V)


@functools.partial(jax.jit, static_argnames=("batchsize_cap", "row_tile"))
def reward_criterion2(seqLogprobs, reward, batchsize_cap, target, row_tile=None):
    """JAX/Pallas equivalent of RewardCriterion2.forward."""
    n_rows = batchsize_cap * (180 - 1)
    assert seqLogprobs.size % n_rows == 0, (
        "seqLogprobs.size must be batchsize_cap*(180-1)*V "
        f"(got size={seqLogprobs.size}, n_rows={n_rows})")
    vocab = seqLogprobs.size // n_rows
    itemsize = jnp.dtype(seqLogprobs.dtype).itemsize

    # Pure views — no pad, no astype of the big slab.
    logp = seqLogprobs.reshape(n_rows, vocab)
    tgt = target.reshape(n_rows, 1).astype(jnp.int32)
    rwd = reward.reshape(n_rows, 1).astype(jnp.float32)

    if row_tile is None:
        rt = _pick_row_tile(n_rows, vocab, itemsize)
    else:
        rt = max(16, (int(row_tile) // 16) * 16)

    num_tiles = pl.cdiv(n_rows, rt)

    # VMEM budget: double-buffered logp tile + tiny tgt/rwd tiles + out block.
    tile_bytes = rt * vocab * itemsize
    side_bytes = rt * 4 + rt * 4
    out_bytes = vocab * 4
    vmem_needed = 2 * (tile_bytes + side_bytes + out_bytes)
    vmem_limit = int(min(48 * 1024 * 1024,
                         max(vmem_needed + (4 << 20), 16 * 1024 * 1024)))

    cost = pl.CostEstimate(
        flops=3 * n_rows * vocab,
        transcendentals=0,
        bytes_accessed=n_rows * vocab * itemsize + n_rows * 8
                       + num_tiles * vocab * 4,
    )

    kernel = functools.partial(_reward_criterion_kernel,
                               n_rows=n_rows, row_tile=rt)

    partials = pl.pallas_call(
        kernel,
        out_shape=jax.ShapeDtypeStruct((num_tiles, 1, vocab), jnp.float32),
        grid_spec=pltpu.PrefetchScalarGridSpec(
            num_scalar_prefetch=0,
            grid=(num_tiles,),
            in_specs=[
                pl.BlockSpec((rt, vocab), lambda i: (i, 0)),
                pl.BlockSpec((rt, 1), lambda i: (i, 0)),
                pl.BlockSpec((rt, 1), lambda i: (i, 0)),
            ],
            out_specs=pl.BlockSpec((1, 1, vocab), lambda i: (i, 0, 0)),
        ),
        compiler_params=pltpu.CompilerParams(
            dimension_semantics=("parallel",),
            vmem_limit_bytes=vmem_limit,
        ),
        cost_estimate=cost,
    )(logp, tgt, rwd)

    return -jnp.sum(partials)


if __name__ == "__main__":
    key = jax.random.PRNGKey(0)
    k1, k2, k3 = jax.random.split(key, 3)

    batchsize_cap = 2            # small batch
    seq_m1 = 180 - 1             # hardcoded in the PyTorch module
    vocab = 128                  # small vocab, lane-aligned

    n_rows = batchsize_cap * seq_m1

    # log-softmax-like inputs (values don't matter for the arithmetic)
    logits = jax.random.normal(k1, (batchsize_cap, seq_m1, vocab), jnp.float32)
    seqLogprobs = jax.nn.log_softmax(logits, axis=-1)
    target = jax.random.randint(k2, (n_rows,), 0, vocab, jnp.int32)
    reward = jax.random.uniform(k3, (n_rows,), jnp.float32)

    # pure-JAX reference
    lp2 = seqLogprobs.reshape(n_rows, vocab)
    ref = -jnp.sum(lp2[jnp.arange(n_rows), target] * reward)

    # 1) default (auto-sized, single big tile for this small problem)
    loss = reward_criterion2(seqLogprobs, reward, batchsize_cap, target)
    loss = jax.block_until_ready(loss)
    assert jnp.allclose(loss, ref, rtol=1e-5, atol=1e-5), (loss, ref)

    # 2) forced small tile to exercise the multi-tile grid + ragged-last-tile mask
    loss2 = reward_criterion2(seqLogprobs, reward, batchsize_cap, target,
                              row_tile=64)
    loss2 = jax.block_until_ready(loss2)
    assert jnp.allclose(loss2, ref, rtol=1e-5, atol=1e-5), (loss2, ref)

    print("KERNEL_OK")
</pallas_src>

<mosaic_0001>
module attributes {stable_mosaic.version = 11 : i64} {
  func.func @_reward_criterion_kernel(%arg0: i32, %arg1: memref<368x128xf32, #tpu.memory_space<vmem>>, %arg2: memref<368x1xi32, #tpu.memory_space<vmem>>, %arg3: memref<368x1xf32, #tpu.memory_space<vmem>>, %arg4: memref<1x1x128xf32, #tpu.memory_space<vmem>>) attributes {dimension_semantics = [#tpu.dimension_semantics<parallel>], iteration_bounds = array<i64: 1>, scalar_prefetch = 0 : i64, scratch_operands = 0 : i64, tpu.core_type = #tpu.core_type<tc>, window_params = [{transform_indices = @transform_0, window_bounds = array<i64: 368, 128>}, {transform_indices = @transform_1, window_bounds = array<i64: 368, 1>}, {transform_indices = @transform_2, window_bounds = array<i64: 368, 1>}, {transform_indices = @transform_3, window_bounds = array<i64: 1, 1, 128>}]} {
    %c0 = arith.constant 0 : index
    %c0_0 = arith.constant 0 : index
    %0 = vector.load %arg1[%c0, %c0_0] : memref<368x128xf32, #tpu.memory_space<vmem>>, vector<368x128xf32>
    %c0_1 = arith.constant 0 : index
    %c0_2 = arith.constant 0 : index
    %1 = vector.load %arg2[%c0_1, %c0_2] : memref<368x1xi32, #tpu.memory_space<vmem>>, vector<368x1xi32>
    %c0_3 = arith.constant 0 : index
    %c0_4 = arith.constant 0 : index
    %2 = vector.load %arg3[%c0_3, %c0_4] : memref<368x1xf32, #tpu.memory_space<vmem>>, vector<368x1xf32>
    %3 = tpu.iota {dimensions = array<i32: 1>} : vector<368x128xi32>
    %4 = tpu.iota {dimensions = array<i32: 0>} : vector<368x128xi32>
    %c368_i32 = arith.constant 368 : i32
    %5 = arith.muli %arg0, %c368_i32 : i32
    %6 = vector.broadcast %5 : i32 to vector<368x128xi32>
    %7 = arith.addi %4, %6 : vector<368x128xi32>
    %c358_i32 = arith.constant 358 : i32
    %8 = vector.broadcast %c358_i32 : i32 to vector<368x128xi32>
    %9 = arith.cmpi slt, %7, %8 : vector<368x128xi32>
    %10 = vector.broadcast %1 : vector<368x1xi32> to vector<368x128xi32>
    %11 = arith.cmpi eq, %3, %10 : vector<368x128xi32>
    %12 = arith.andi %11, %9 : vector<368x128xi1>
    %13 = vector.broadcast %2 : vector<368x1xf32> to vector<368x128xf32>
    %14 = arith.mulf %0, %13 : vector<368x128xf32>
    %cst = arith.constant 0.000000e+00 : f32
    %15 = vector.broadcast %cst : f32 to vector<368x128xf32>
    %16 = arith.select %12, %14, %15 : vector<368x128xi1>, vector<368x128xf32>
    %cst_5 = arith.constant dense<0.000000e+00> : vector<128xf32>
    %17 = vector.multi_reduction <add>, %16, %cst_5 [0] : vector<368x128xf32> to vector<128xf32>
    %18 = vector.shape_cast %17 : vector<128xf32> to vector<1x128xf32>
    %19 = vector.shape_cast %18 : vector<1x128xf32> to vector<1x1x128xf32>
    %c0_6 = arith.constant 0 : index
    %c0_7 = arith.constant 0 : index
    %c0_8 = arith.constant 0 : index
    %20 = vector.load %arg4[%c0_6, %c0_7, %c0_8] : memref<1x1x128xf32, #tpu.memory_space<vmem>>, vector<1x1x128xf32>
    tpu.vector_store %arg4[%c0_6, %c0_7, %c0_8], %19 {strides = array<i32>} : memref<1x1x128xf32, #tpu.memory_space<vmem>>, vector<1x1x128xf32>,
    return
  }
  func.func @transform_0(%arg0: i32) -> (i32, i32) {
    %c0_i32 = arith.constant 0 : i32
    %c0_i32_0 = arith.constant 0 : i32
    return %arg0, %c0_i32 : i32, i32
  }
  func.func @transform_1(%arg0: i32) -> (i32, i32) {
    %c0_i32 = arith.constant 0 : i32
    %c0_i32_0 = arith.constant 0 : i32
    return %arg0, %c0_i32 : i32, i32
  }
  func.func @transform_2(%arg0: i32) -> (i32, i32) {
    %c0_i32 = arith.constant 0 : i32
    %c0_i32_0 = arith.constant 0 : i32
    return %arg0, %c0_i32 : i32, i32
  }
  func.func @transform_3(%arg0: i32) -> (i32, i32, i32) {
    %c0_i32 = arith.constant 0 : i32
    %c0_i32_0 = arith.constant 0 : i32
    %c0_i32_1 = arith.constant 0 : i32
    return %arg0, %c0_i32, %c0_i32_0 : i32, i32, i32
  }
}

</mosaic_0001>

<bundles_post_ra>
// kernel: reward_criterion2.1
= control target key start
LH: loop header
LB: loop body
LE: loop exit
PB: predicated region body
PF: predicated region fallthrough
CT: control target
= control target key end

     0   :  { %v906_v0 = vmov 0   ;;  %s1519_s1 = inlined_call_operand.vmem [shape: s32[358,1], index: 1, kind: input, shape index: {}]   ;;  %s1520_s2 = inlined_call_operand.vmem [shape: f32[358,1], index: 2, kind: input, shape index: {}]   ;;  %s1521_s0 = inlined_call_operand.vmem [shape: f32[358,128], index: 0, kind: input, shape index: {}]   ;;  %s1522_s3 = inlined_call_operand.vmem [shape: f32[1,1,128], index: 3, kind: output, shape index: {}]  }
   0x1   :  { %905 = vset.pattern.permute.xlu1 %v906_v0  ;;  %904 = vset.pattern.permute.xlu0 %v906_v0  ;;  %v62_v1 = vld [vmem:[%s1519_s1 + $0x10] sm:$0xff]  ;;  %v60_v2 = vld [vmem:[%s1519_s1] sm:$0xff]  ;;  %v63_v3 = vld [vmem:[%s1519_s1 + $0x18] sm:$0xff] }
   0x2   :  { %302 = vperm.xlu1 %905, %v62_v1   ;;  %296 = vperm.xlu0 %904, %v60_v2   ;;  %v61_v4 = vld [vmem:[%s1519_s1 + $0x8] sm:$0xff]  ;;  %v64_v6 = vld [vmem:[%s1519_s1 + $0x20] sm:$0xff]  ;;  %v67_v7 = vld [vmem:[%s1519_s1 + $0x38] sm:$0xff] }
   0x3   :  { %v65_v5 = vld [vmem:[%s1519_s1 + $0x28] sm:$0xff]  ;;  %v66_v8 = vld [vmem:[%s1519_s1 + $0x30] sm:$0xff]  ;;  %v68_v10 = vld [vmem:[%s1519_s1 + $0x40] sm:$0xff] }
   0x4   :  { %v69_v9 = vld [vmem:[%s1519_s1 + $0x48] sm:$0xff]  ;;  %v71_v11 = vld [vmem:[%s1519_s1 + $0x58] sm:$0xff]  ;;  %v70_v12 = vld [vmem:[%s1519_s1 + $0x50] sm:$0xff] }
   0x5   :  { %v73_v13 = vld [vmem:[%s1519_s1 + $0x68] sm:$0xff]  ;;  %v72_v14 = vld [vmem:[%s1519_s1 + $0x60] sm:$0xff]  ;;  %v75_v15 = vld [vmem:[%s1519_s1 + $0x78] sm:$0xff] }
   0x6   :  { %305 = vperm.xlu1 %905, %v63_v3   ;;  %299 = vperm.xlu0 %904, %v61_v4   ;;  %v74_v16 = vld [vmem:[%s1519_s1 + $0x70] sm:$0xff]  ;;  %v77_v17 = vld [vmem:[%s1519_s1 + $0x88] sm:$0xff]  ;;  %v76_v18 = vld [vmem:[%s1519_s1 + $0x80] sm:$0xff] }
   0x7   :  { %v79_v19 = vld [vmem:[%s1519_s1 + $0x98] sm:$0xff]  ;;  %v78_v20 = vld [vmem:[%s1519_s1 + $0x90] sm:$0xff]  ;;  %v81_v21 = vld [vmem:[%s1519_s1 + $0xa8] sm:$0xff] }
   0x8   :  { %v80_v22 = vld [vmem:[%s1519_s1 + $0xa0] sm:$0xff]  ;;  %v83_v23 = vld [vmem:[%s1519_s1 + $0xb8] sm:$0xff]  ;;  %v82_v24 = vld [vmem:[%s1519_s1 + $0xb0] sm:$0xff] }
   0x9   :  { %v85_v25 = vld [vmem:[%s1519_s1 + $0xc8] sm:$0xff]  ;;  %v84_v26 = vld [vmem:[%s1519_s1 + $0xc0] sm:$0xff]  ;;  %v87_v27 = vld [vmem:[%s1519_s1 + $0xd8] sm:$0xff] }
   0xa   :  { %311 = vperm.xlu1 %905, %v65_v5   ;;  %308 = vperm.xlu0 %904, %v64_v6   ;;  %v86_v28 = vld [vmem:[%s1519_s1 + $0xd0] sm:$0xff]  ;;  %v89_v29 = vld [vmem:[%s1519_s1 + $0xe8] sm:$0xff]  ;;  %v88_v30 = vld [vmem:[%s1519_s1 + $0xe0] sm:$0xff] }
   0xb   :  { %v91_v31 = vld [vmem:[%s1519_s1 + $0xf8] sm:$0xff]  ;;  %v90_v32 = vld [vmem:[%s1519_s1 + $0xf0] sm:$0xff]  ;;  %v93_v33 = vld [vmem:[%s1519_s1 + $0x108] sm:$0xff] }
   0xc   :  { %v92_v34 = vld [vmem:[%s1519_s1 + $0x100] sm:$0xff]  ;;  %v95_v35 = vld [vmem:[%s1519_s1 + $0x118] sm:$0xff]  ;;  %v94_v36 = vld [vmem:[%s1519_s1 + $0x110] sm:$0xff] }
   0xd   :  { %v97_v37 = vld [vmem:[%s1519_s1 + $0x128] sm:$0xff]  ;;  %v96_v38 = vld [vmem:[%s1519_s1 + $0x120] sm:$0xff]  ;;  %v99_v39 = vld [vmem:[%s1519_s1 + $0x138] sm:$0xff] }
   0xe   :  { %317 = vperm.xlu1 %905, %v67_v7   ;;  %314 = vperm.xlu0 %904, %v66_v8   ;;  %v98_v40 = vld [vmem:[%s1519_s1 + $0x130] sm:$0xff]  ;;  %v101_v41 = vld [vmem:[%s1519_s1 + $0x148] sm:$0xff]  ;;  %v100_v42 = vld [vmem:[%s1519_s1 + $0x140] sm:$0xff] }
   0xf   :  { %v103_v43 = vld [vmem:[%s1519_s1 + $0x158] sm:$0xff]  ;;  %v102_v44 = vld [vmem:[%s1519_s1 + $0x150] sm:$0xff]  ;;  %v106_v45 = vld [vmem:[%s1520_s2] sm:$0xff] }
  0x10   :  { %v104_v46 = vld [vmem:[%s1519_s1 + $0x160] sm:$0xff]  ;;  %v108_v47 = vld [vmem:[%s1520_s2 + $0x10] sm:$0xff]  ;;  %v107_v48 = vld [vmem:[%s1520_s2 + $0x8] sm:$0xff] }
  0x11   :  { %v110_v49 = vld [vmem:[%s1520_s2 + $0x20] sm:$0xff]  ;;  %v109_v50 = vld [vmem:[%s1520_s2 + $0x18] sm:$0xff]  ;;  %v112_v51 = vld [vmem:[%s1520_s2 + $0x30] sm:$0xff] }
  0x12   :  { %323 = vperm.xlu1 %905, %v69_v9   ;;  %320 = vperm.xlu0 %904, %v68_v10   ;;  %v111_v52 = vld [vmem:[%s1520_s2 + $0x28] sm:$0xff]  ;;  %v114_v53 = vld [vmem:[%s1520_s2 + $0x40] sm:$0xff]  ;;  %v113_v54 = vld [vmem:[%s1520_s2 + $0x38] sm:$0xff] }
  0x13   :  { %v116_v55 = vld [vmem:[%s1520_s2 + $0x50] sm:$0xff]  ;;  %v115_v56 = vld [vmem:[%s1520_s2 + $0x48] sm:$0xff]  ;;  %v118_v57 = vld [vmem:[%s1520_s2 + $0x60] sm:$0xff] }
  0x14   :  { %v117_v58 = vld [vmem:[%s1520_s2 + $0x58] sm:$0xff]  ;;  %v120_v59 = vld [vmem:[%s1520_s2 + $0x70] sm:$0xff]  ;;  %v119_v60 = vld [vmem:[%s1520_s2 + $0x68] sm:$0xff] }
  0x15   :  { %v122_v61 = vld [vmem:[%s1520_s2 + $0x80] sm:$0xff]  ;;  %v121_v62 = vld [vmem:[%s1520_s2 + $0x78] sm:$0xff]  ;;  %v124_v63 = vld [vmem:[%s1520_s2 + $0x90] sm:$0xff] }
  0x16   :  { %329 = vperm.xlu1 %905, %v71_v11   ;;  %326 = vperm.xlu0 %904, %v70_v12   ;;  %v123_v0 = vld [vmem:[%s1520_s2 + $0x88] sm:$0xff]  ;;  %v126_v3 = vld [vmem:[%s1520_s2 + $0xa0] sm:$0xff]  ;;  %v125_v4 = vld [vmem:[%s1520_s2 + $0x98] sm:$0xff] }
  0x17   :  { %v128_v7 = vld [vmem:[%s1520_s2 + $0xb0] sm:$0xff]  ;;  %v127_v8 = vld [vmem:[%s1520_s2 + $0xa8] sm:$0xff]  ;;  %v130_v11 = vld [vmem:[%s1520_s2 + $0xc0] sm:$0xff] }
  0x18   :  { %v129_v12 = vld [vmem:[%s1520_s2 + $0xb8] sm:$0xff] }
  0x1a   :  { %335 = vperm.xlu1 %905, %v73_v13   ;;  %332 = vperm.xlu0 %904, %v72_v14  }
  0x1e   :  { %341 = vperm.xlu1 %905, %v75_v15   ;;  %338 = vperm.xlu0 %904, %v74_v16   ;;  %v132_v15 = vld [vmem:[%s1520_s2 + $0xd0] sm:$0xff]  ;;  %v131_v16 = vld [vmem:[%s1520_s2 + $0xc8] sm:$0xff] }
  0x22   :  { %347 = vperm.xlu1 %905, %v77_v17   ;;  %344 = vperm.xlu0 %904, %v76_v18  }
  0x26   :  { %353 = vperm.xlu1 %905, %v79_v19   ;;  %350 = vperm.xlu0 %904, %v78_v20   ;;  %v134_v19 = vld [vmem:[%s1520_s2 + $0xe0] sm:$0xff]  ;;  %v133_v20 = vld [vmem:[%s1520_s2 + $0xd8] sm:$0xff] }
  0x2a   :  { %359 = vperm.xlu1 %905, %v81_v21   ;;  %356 = vperm.xlu0 %904, %v80_v22  }
  0x2e   :  { %365 = vperm.xlu1 %905, %v83_v23   ;;  %362 = vperm.xlu0 %904, %v82_v24   ;;  %v136_v23 = vld [vmem:[%s1520_s2 + $0xf0] sm:$0xff]  ;;  %v135_v24 = vld [vmem:[%s1520_s2 + $0xe8] sm:$0xff] }
  0x32   :  { %371 = vperm.xlu1 %905, %v85_v25   ;;  %368 = vperm.xlu0 %904, %v84_v26  }
  0x36   :  { %377 = vperm.xlu1 %905, %v87_v27   ;;  %374 = vperm.xlu0 %904, %v86_v28   ;;  %v138_v27 = vld [vmem:[%s1520_s2 + $0x100] sm:$0xff]  ;;  %v137_v28 = vld [vmem:[%s1520_s2 + $0xf8] sm:$0xff] }
  0x3a   :  { %383 = vperm.xlu1 %905, %v89_v29   ;;  %380 = vperm.xlu0 %904, %v88_v30  }
  0x3e   :  { %389 = vperm.xlu1 %905, %v91_v31   ;;  %386 = vperm.xlu0 %904, %v90_v32   ;;  %v140_v31 = vld [vmem:[%s1520_s2 + $0x110] sm:$0xff]  ;;  %v139_v32 = vld [vmem:[%s1520_s2 + $0x108] sm:$0xff] }
  0x42   :  { %395 = vperm.xlu1 %905, %v93_v33   ;;  %392 = vperm.xlu0 %904, %v92_v34  }
  0x46   :  { %401 = vperm.xlu1 %905, %v95_v35   ;;  %398 = vperm.xlu0 %904, %v94_v36   ;;  %v142_v35 = vld [vmem:[%s1520_s2 + $0x120] sm:$0xff]  ;;  %v141_v36 = vld [vmem:[%s1520_s2 + $0x118] sm:$0xff] }
  0x4a   :  { %407 = vperm.xlu1 %905, %v97_v37   ;;  %404 = vperm.xlu0 %904, %v96_v38  }
  0x4e   :  { %413 = vperm.xlu1 %905, %v99_v39   ;;  %410 = vperm.xlu0 %904, %v98_v40   ;;  %v144_v39 = vld [vmem:[%s1520_s2 + $0x130] sm:$0xff]  ;;  %v143_v40 = vld [vmem:[%s1520_s2 + $0x128] sm:$0xff] }
  0x52   :  { %419 = vperm.xlu1 %905, %v101_v41   ;;  %416 = vperm.xlu0 %904, %v100_v42  }
  0x56   :  { %425 = vperm.xlu1 %905, %v103_v43   ;;  %422 = vperm.xlu0 %904, %v102_v44   ;;  %v146_v43 = vld [vmem:[%s1520_s2 + $0x140] sm:$0xff]  ;;  %v145_v44 = vld [vmem:[%s1520_s2 + $0x138] sm:$0xff] }
  0x5a   :  { %527 = vperm.xlu1 %905, %v106_v45   ;;  %428 = vperm.xlu0 %904, %v104_v46  }
  0x5e   :  { %537 = vperm.xlu1 %905, %v108_v47   ;;  %532 = vperm.xlu0 %904, %v107_v48   ;;  %v148_v47 = vld [vmem:[%s1520_s2 + $0x150] sm:$0xff]  ;;  %v147_v48 = vld [vmem:[%s1520_s2 + $0x148] sm:$0xff] }
  0x62   :  { %547 = vperm.xlu1 %905, %v110_v49   ;;  %542 = vperm.xlu0 %904, %v109_v50  }
  0x66   :  { %557 = vperm.xlu1 %905, %v112_v51   ;;  %552 = vperm.xlu0 %904, %v111_v52   ;;  %v150_v51 = vld [vmem:[%s1520_s2 + $0x160] sm:$0xff]  ;;  %v149_v52 = vld [vmem:[%s1520_s2 + $0x158] sm:$0xff] }
  0x6a   :  { %567 = vperm.xlu1 %905, %v114_v53   ;;  %562 = vperm.xlu0 %904, %v113_v54  }
  0x6e   :  { %577 = vperm.xlu1 %905, %v116_v55   ;;  %572 = vperm.xlu0 %904, %v115_v56  }
  0x72   :  { %587 = vperm.xlu1 %905, %v118_v57   ;;  %582 = vperm.xlu0 %904, %v117_v58  }
  0x76   :  { %597 = vperm.xlu1 %905, %v120_v59   ;;  %592 = vperm.xlu0 %904, %v119_v60  }
  0x7a   :  { %607 = vperm.xlu1 %905, %v122_v61   ;;  %602 = vperm.xlu0 %904, %v121_v62  }
  0x7d   :  { %v1119_v1 = vpop.permute.xlu1 %302  ;;  %v1121_v2 = vpop.permute.xlu0 %296 }
  0x7e   :  { %617 = vperm.xlu1 %905, %v124_v63   ;;  %612 = vperm.xlu0 %904, %v123_v0  }
  0x81   :  { %v1129_v5 = vpop.permute.xlu1 %305  ;;  %v1131_v6 = vpop.permute.xlu0 %299 }
  0x82   :  { %627 = vperm.xlu1 %905, %v126_v3   ;;  %622 = vperm.xlu0 %904, %v125_v4  }
  0x85   :  { %v1139_v9 = vpop.permute.xlu1 %311  ;;  %v1141_v10 = vpop.permute.xlu0 %308 }
  0x86   :  { %637 = vperm.xlu1 %905, %v128_v7   ;;  %632 = vperm.xlu0 %904, %v127_v8  }
  0x89   :  { %v1149_v13 = vpop.permute.xlu1 %317  ;;  %v1151_v14 = vpop.permute.xlu0 %314 }
  0x8a   :  { %647 = vperm.xlu1 %905, %v130_v11   ;;  %642 = vperm.xlu0 %904, %v129_v12  }
  0x8d   :  { %v1159_v17 = vpop.permute.xlu1 %323  ;;  %v1161_v18 = vpop.permute.xlu0 %320 }
  0x8e   :  { %657 = vperm.xlu1 %905, %v132_v15   ;;  %652 = vperm.xlu0 %904, %v131_v16   ;;  %v152_v15 = vlaneseq }
  0x91   :  { %v1169_v21 = vpop.permute.xlu1 %329  ;;  %v1171_v22 = vpop.permute.xlu0 %326 }
  0x92   :  { %667 = vperm.xlu1 %905, %v134_v19   ;;  %662 = vperm.xlu0 %904, %v133_v20   ;;  %v14_v19 = vld [vmem:[%s1521_s0] sm:$0xff] }
  0x95   :  { %v1179_v25 = vpop.permute.xlu1 %335  ;;  %v1181_v26 = vpop.permute.xlu0 %332 }
  0x96   :  { %677 = vperm.xlu1 %905, %v136_v23   ;;  %672 = vperm.xlu0 %904, %v135_v24   ;;  %v1291_v23 = vand.u32 127, %v152_v15  ;;  %v16_v24 = vld [vmem:[%s1521_s0 + $0x10] sm:$0xff] }
  0x98   :  { %vm433_vm0 = vcmp.eq.s32.totalorder %v1291_v23, %v1121_v2  ;;  %vm434_vm1 = vcmp.eq.s32.totalorder %v1291_v23, %v1131_v6  ;;  %vm435_vm2 = vcmp.eq.s32.totalorder %v1291_v23, %v1119_v1  ;;  %vm436_vm3 = vcmp.eq.s32.totalorder %v1291_v23, %v1129_v5 }
  0x99   :  { %v1189_v29 = vpop.permute.xlu1 %341  ;;  %v1191_v30 = vpop.permute.xlu0 %338  ;;  %vm437_vm4 = vcmp.eq.s32.totalorder %v1291_v23, %v1141_v10  ;;  %vm438_vm5 = vcmp.eq.s32.totalorder %v1291_v23, %v1139_v9  ;;  %vm439_vm6 = vcmp.eq.s32.totalorder %v1291_v23, %v1151_v14  ;;  %vm440_vm7 = vcmp.eq.s32.totalorder %v1291_v23, %v1149_v13 }
  0x9a   :  { %687 = vperm.xlu1 %905, %v138_v27   ;;  %682 = vperm.xlu0 %904, %v137_v28   ;;  %v15_v27 = vld [vmem:[%s1521_s0 + $0x8] sm:$0xff]  ;;  %vm441_vm8 = vcmp.eq.s32.totalorder %v1291_v23, %v1161_v18  ;;  %vm442_vm9 = vcmp.eq.s32.totalorder %v1291_v23, %v1159_v17  ;;  %vm443_vm10 = vcmp.eq.s32.totalorder %v1291_v23, %v1171_v22 }
  0x9b   :  { %vm444_vm11 = vcmp.eq.s32.totalorder %v1291_v23, %v1169_v21  ;;  %vm445_vm12 = vcmp.eq.s32.totalorder %v1291_v23, %v1181_v26  ;;  %vm446_vm13 = vcmp.eq.s32.totalorder %v1291_v23, %v1179_v25  ;;  %vm447_vm14 = vcmp.eq.s32.totalorder %v1291_v23, %v1191_v30 }
  0x9c   :  { %vm448_vm15 = vcmp.eq.s32.totalorder %v1291_v23, %v1189_v29 }
  0x9d   :  { %v1199_v33 = vpop.permute.xlu1 %347  ;;  %v1201_v34 = vpop.permute.xlu0 %344 }
  0x9e   :  { %697 = vperm.xlu1 %905, %v140_v31   ;;  %692 = vperm.xlu0 %904, %v139_v32  }
  0xa1   :  { %v1209_v37 = vpop.permute.xlu1 %353  ;;  %v1211_v38 = vpop.permute.xlu0 %350 }
  0xa2   :  { %707 = vperm.xlu1 %905, %v142_v35   ;;  %702 = vperm.xlu0 %904, %v141_v36  }
  0xa5   :  { %v1219_v41 = vpop.permute.xlu1 %359  ;;  %v1221_v42 = vpop.permute.xlu0 %356 }
  0xa6   :  { %717 = vperm.xlu1 %905, %v144_v39   ;;  %712 = vperm.xlu0 %904, %v143_v40   ;;  %v18_v39 = vld [vmem:[%s1521_s0 + $0x20] sm:$0xff]  ;;  %v17_v40 = vld [vmem:[%s1521_s0 + $0x18] sm:$0xff] }
  0xa9   :  { %v1229_v45 = vpop.permute.xlu1 %365  ;;  %v1231_v46 = vpop.permute.xlu0 %362 }
  0xaa   :  { %727 = vperm.xlu1 %905, %v146_v43   ;;  %722 = vperm.xlu0 %904, %v145_v44  }
  0xad   :  { %v1239_v49 = vpop.permute.xlu1 %371  ;;  %v1241_v50 = vpop.permute.xlu0 %368 }
  0xae   :  { %737 = vperm.xlu1 %905, %v148_v47   ;;  %732 = vperm.xlu0 %904, %v147_v48  }
  0xb1   :  { %v1249_v53 = vpop.permute.xlu1 %377  ;;  %v1251_v54 = vpop.permute.xlu0 %374 }
  0xb2   :  { %747 = vperm.xlu1 %905, %v150_v51   ;;  %742 = vperm.xlu0 %904, %v149_v52  }
  0xb5   :  { %v1253_v55 = vpop.permute.xlu1 %383  ;;  %v1255_v56 = vpop.permute.xlu0 %380 }
  0xb9   :  { %v1257_v57 = vpop.permute.xlu1 %389  ;;  %v1259_v58 = vpop.permute.xlu0 %386 }
  0xbd   :  { %v1261_v59 = vpop.permute.xlu1 %395  ;;  %v1263_v60 = vpop.permute.xlu0 %392 }
  0xc1   :  { %v1265_v61 = vpop.permute.xlu1 %401  ;;  %v1267_v62 = vpop.permute.xlu0 %398 }
  0xc5   :  { %v1269_v63 = vpop.permute.xlu1 %407  ;;  %v1271_v0 = vpop.permute.xlu0 %404 }
  0xc9   :  { %v1273_v3 = vpop.permute.xlu1 %413  ;;  %v1275_v4 = vpop.permute.xlu0 %410 }
  0xcd   :  { %v1277_v7 = vpop.permute.xlu1 %419  ;;  %v1279_v8 = vpop.permute.xlu0 %416 }
  0xd1   :  { %v1281_v11 = vpop.permute.xlu1 %425  ;;  %v1283_v12 = vpop.permute.xlu0 %422 }
  0xd5   :  { %v528_v16 = vpop.permute.xlu1 %527  ;;  %v1288_v20 = vpop.permute.xlu0 %428 }
  0xd6   :  { %v755_v28 = vmul.f32 %v528_v16, %v14_v19  ;;  %v20_v19 = vld [vmem:[%s1521_s0 + $0x30] sm:$0xff] }
  0xd8   :  { %v801_v43 = vsel %vm433_vm0, %v755_v28, 0.0  ;;  %vm449_vm0 = vcmp.eq.s32.totalorder %v1291_v23, %v1201_v34 }
  0xd9   :  { %v538_v31 = vpop.permute.xlu1 %537  ;;  %v533_v32 = vpop.permute.xlu0 %532 }
  0xda   :  { %v757_v35 = vmul.f32 %v538_v31, %v16_v24  ;;  %v756_v36 = vmul.f32 %v533_v32, %v15_v27  ;;  %v19_v24 = vld [vmem:[%s1521_s0 + $0x28] sm:$0xff] }
  0xdc   :  { %v802_v44 = vsel %vm434_vm1, %v756_v36, 0.0  ;;  %v803_v2 = vsel %vm435_vm2, %v757_v35, 0.0  ;;  %vm450_vm1 = vcmp.eq.s32.totalorder %v1291_v23, %v1199_v33  ;;  %vm451_vm2 = vcmp.eq.s32.totalorder %v1291_v23, %v1211_v38 }
  0xdd   :  { %v847_v47 = vadd.f32 %v802_v44, %v801_v43  ;;  %v548_v48 = vpop.permute.xlu1 %547  ;;  %v543_v51 = vpop.permute.xlu0 %542 }
  0xde   :  { %v759_v52 = vmul.f32 %v548_v48, %v18_v39  ;;  %v758_v16 = vmul.f32 %v543_v51, %v17_v40  ;;  %v22_v39 = vld [vmem:[%s1521_s0 + $0x40] sm:$0xff]  ;;  %v21_v40 = vld [vmem:[%s1521_s0 + $0x38] sm:$0xff] }
  0xdf   :  { %v848_v6 = vadd.f32 %v847_v47, %v803_v2 }
  0xe0   :  { %v804_v27 = vsel %vm436_vm3, %v758_v16, 0.0  ;;  %v805_v32 = vsel %vm437_vm4, %v759_v52, 0.0  ;;  %v24_v52 = vld [vmem:[%s1521_s0 + $0x50] sm:$0xff]  ;;  %v23_v16 = vld [vmem:[%s1521_s0 + $0x48] sm:$0xff]  ;;  %vm452_vm3 = vcmp.eq.s32.totalorder %v1291_v23, %v1209_v37  ;;  %vm453_vm4 = vcmp.eq.s32.totalorder %v1291_v23, %v1221_v42 }
  0xe1   :  { %v849_v1 = vadd.f32 %v848_v6, %v804_v27  ;;  %v558_v28 = vpop.permute.xlu1 %557  ;;  %v553_v31 = vpop.permute.xlu0 %552 }
  0xe2   :  { %v761_v35 = vmul.f32 %v558_v28, %v20_v19  ;;  %v760_v36 = vmul.f32 %v553_v31, %v19_v24  ;;  %v26_v31 = vld [vmem:[%s1521_s0 + $0x60] sm:$0xff] }
  0xe3   :  { %v850_v5 = vadd.f32 %v849_v1, %v805_v32  ;;  %v25_v32 = vld [vmem:[%s1521_s0 + $0x58] sm:$0xff] }
  0xe4   :  { %v806_v43 = vsel %vm438_vm5, %v760_v36, 0.0  ;;  %v807_v48 = vsel %vm439_vm6, %v761_v35, 0.0  ;;  %vm454_vm5 = vcmp.eq.s32.totalorder %v1291_v23, %v1219_v41  ;;  %vm455_vm6 = vcmp.eq.s32.totalorder %v1291_v23, %v1231_v46 }
  0xe5   :  { %v851_v10 = vadd.f32 %v850_v5, %v806_v43  ;;  %v568_v44 = vpop.permute.xlu1 %567  ;;  %v563_v47 = vpop.permute.xlu0 %562 }
  0xe6   :  { %v763_v51 = vmul.f32 %v568_v44, %v22_v39  ;;  %v762_v2 = vmul.f32 %v563_v47, %v21_v40  ;;  %v27_v44 = vld [vmem:[%s1521_s0 + $0x68] sm:$0xff] }
  0xe7   :  { %v852_v9 = vadd.f32 %v851_v10, %v807_v48  ;;  %v28_v10 = vld [vmem:[%s1521_s0 + $0x70] sm:$0xff] }
  0xe8   :  { %v808_v6 = vsel %vm440_vm7, %v762_v2, 0.0  ;;  %v809_v27 = vsel %vm441_vm8, %v763_v51, 0.0  ;;  %vm456_vm7 = vcmp.eq.s32.totalorder %v1291_v23, %v1229_v45  ;;  %vm457_vm8 = vcmp.eq.s32.totalorder %v1291_v23, %v1241_v50 }
  0xe9   :  { %v853_v14 = vadd.f32 %v852_v9, %v808_v6  ;;  %v578_v19 = vpop.permute.xlu1 %577  ;;  %v573_v24 = vpop.permute.xlu0 %572  ;;  %v29_v6 = vld [vmem:[%s1521_s0 + $0x78] sm:$0xff] }
  0xea   :  { %v765_v1 = vmul.f32 %v578_v19, %v24_v52  ;;  %v764_v28 = vmul.f32 %v573_v24, %v23_v16  ;;  %v30_v16 = vld [vmem:[%s1521_s0 + $0x80] sm:$0xff] }
  0xeb   :  { %v854_v13 = vadd.f32 %v853_v14, %v809_v27 }
  0xec   :  { %v810_v35 = vsel %vm442_vm9, %v764_v28, 0.0  ;;  %v811_v39 = vsel %vm443_vm10, %v765_v1, 0.0  ;;  %vm458_vm9 = vcmp.eq.s32.totalorder %v1291_v23, %v1239_v49  ;;  %vm459_vm10 = vcmp.eq.s32.totalorder %v1291_v23, %v1251_v54 }
  0xed   :  { %v855_v18 = vadd.f32 %v854_v13, %v810_v35  ;;  %v588_v36 = vpop.permute.xlu1 %587  ;;  %v583_v5 = vpop.permute.xlu0 %582  ;;  %v32_v13 = vld [vmem:[%s1521_s0 + $0x90] sm:$0xff] }
  0xee   :  { %v767_v40 = vmul.f32 %v588_v36, %v26_v31  ;;  %v766_v43 = vmul.f32 %v583_v5, %v25_v32  ;;  %v31_v31 = vld [vmem:[%s1521_s0 + $0x88] sm:$0xff] }
  0xef   :  { %v856_v17 = vadd.f32 %v855_v18, %v811_v39 }
  0xf0   :  { %v812_v47 = vsel %vm444_vm11, %v766_v43, 0.0  ;;  %v813_v2 = vsel %vm445_vm12, %v767_v40, 0.0  ;;  %v34_v40 = vld [vmem:[%s1521_s0 + $0xa0] sm:$0xff]  ;;  %v33_v43 = vld [vmem:[%s1521_s0 + $0x98] sm:$0xff]  ;;  %vm460_vm11 = vcmp.eq.s32.totalorder %v1291_v23, %v1249_v53  ;;  %vm461_vm12 = vcmp.eq.s32.totalorder %v1291_v23, %v1255_v56 }
  0xf1   :  { %v857_v22 = vadd.f32 %v856_v17, %v812_v47  ;;  %v598_v48 = vpop.permute.xlu1 %597  ;;  %v593_v51 = vpop.permute.xlu0 %592 }
  0xf2   :  { %v769_v9 = vmul.f32 %v598_v48, %v28_v10  ;;  %v768_v52 = vmul.f32 %v593_v51, %v27_v44  ;;  %v36_v51 = vld [vmem:[%s1521_s0 + $0xb0] sm:$0xff] }
  0xf3   :  { %v858_v21 = vadd.f32 %v857_v22, %v813_v2  ;;  %v35_v2 = vld [vmem:[%s1521_s0 + $0xa8] sm:$0xff] }
  0xf4   :  { %v814_v14 = vsel %vm446_vm13, %v768_v52, 0.0  ;;  %v815_v27 = vsel %vm447_vm14, %v769_v9, 0.0  ;;  %vm462_vm13 = vcmp.eq.s32.totalorder %v1291_v23, %v1253_v55  ;;  %vm463_vm14 = vcmp.eq.s32.totalorder %v1291_v23, %v1259_v58 }
  0xf5   :  { %v859_v26 = vadd.f32 %v858_v21, %v814_v14  ;;  %v608_v19 = vpop.permute.xlu1 %607  ;;  %v603_v24 = vpop.permute.xlu0 %602 }
  0xf6   :  { %v771_v1 = vmul.f32 %v608_v19, %v30_v16  ;;  %v770_v28 = vmul.f32 %v603_v24, %v29_v6  ;;  %v37_v19 = vld [vmem:[%s1521_s0 + $0xb8] sm:$0xff] }
  0xf7   :  { %v860_v25 = vadd.f32 %v859_v26, %v815_v27  ;;  %v38_v26 = vld [vmem:[%s1521_s0 + $0xc0] sm:$0xff] }
  0xf8   :  { %v816_v32 = vsel %vm448_vm15, %v770_v28, 0.0  ;;  %v817_v36 = vsel %vm449_vm0, %v771_v1, 0.0  ;;  %vm464_vm15 = vcmp.eq.s32.totalorder %v1291_v23, %v1257_v57  ;;  %vm465_vm0 = vcmp.eq.s32.totalorder %v1291_v23, %v1263_v60 }
  0xf9   :  { %v861_v30 = vadd.f32 %v860_v25, %v816_v32  ;;  %v618_v35 = vpop.permute.xlu1 %617  ;;  %v613_v18 = vpop.permute.xlu0 %612  ;;  %v39_v32 = vld [vmem:[%s1521_s0 + $0xc8] sm:$0xff] }
  0xfa   :  { %v773_v5 = vmul.f32 %v618_v35, %v32_v13  ;;  %v772_v39 = vmul.f32 %v613_v18, %v31_v31  ;;  %v40_v31 = vld [vmem:[%s1521_s0 + $0xd0] sm:$0xff] }
  0xfb   :  { %v862_v29 = vadd.f32 %v861_v30, %v817_v36 }
  0xfc   :  { %v818_v17 = vsel %vm450_vm1, %v772_v39, 0.0  ;;  %v819_v47 = vsel %vm451_vm2, %v773_v5, 0.0  ;;  %vm466_vm1 = vcmp.eq.s32.totalorder %v1291_v23, %v1261_v59  ;;  %vm467_vm2 = vcmp.eq.s32.totalorder %v1291_v23, %v1267_v62 }
  0xfd   :  { %v863_v34 = vadd.f32 %v862_v29, %v818_v17  ;;  %v628_v10 = vpop.permute.xlu1 %627  ;;  %v623_v44 = vpop.permute.xlu0 %622  ;;  %v42_v29 = vld [vmem:[%s1521_s0 + $0xe0] sm:$0xff] }
  0xfe   :  { %v775_v22 = vmul.f32 %v628_v10, %v34_v40  ;;  %v774_v48 = vmul.f32 %v623_v44, %v33_v43  ;;  %v41_v40 = vld [vmem:[%s1521_s0 + $0xd8] sm:$0xff] }
  0xff   :  { %v864_v33 = vadd.f32 %v863_v34, %v819_v47 }
 0x100   :  { %v820_v9 = vsel %vm452_vm3, %v774_v48, 0.0  ;;  %v821_v16 = vsel %vm453_vm4, %v775_v22, 0.0  ;;  %v44_v22 = vld [vmem:[%s1521_s0 + $0xf0] sm:$0xff]  ;;  %v43_v48 = vld [vmem:[%s1521_s0 + $0xe8] sm:$0xff]  ;;  %vm468_vm3 = vcmp.eq.s32.totalorder %v1291_v23, %v1265_v61  ;;  %vm469_vm4 = vcmp.eq.s32.totalorder %v1291_v23, %v1271_v0 }
 0x101   :  { %v865_v38 = vadd.f32 %v864_v33, %v820_v9  ;;  %v638_v52 = vpop.permute.xlu1 %637  ;;  %v633_v21 = vpop.permute.xlu0 %632  ;;  %v155_v0 = vshrl.u32 %v152_v15, 7 }
 0x102   :  { %v777_v6 = vmul.f32 %v638_v52, %v36_v51  ;;  %v776_v14 = vmul.f32 %v633_v21, %v35_v2  ;;  %v46_v21 = vld [vmem:[%s1521_s0 + $0x100] sm:$0xff] }
 0x103   :  { %v866_v37 = vadd.f32 %v865_v38, %v821_v16  ;;  %v45_v16 = vld [vmem:[%s1521_s0 + $0xf8] sm:$0xff]  ;;  %v199_v15 = vadd.s32 352, %v155_v0 }
 0x104   :  { %v822_v24 = vsel %vm454_vm5, %v776_v14, 0.0  ;;  %v823_v28 = vsel %vm455_vm6, %v777_v6, 0.0  ;;  %vm470_vm5 = vcmp.eq.s32.totalorder %v1291_v23, %v1269_v63  ;;  %vm471_vm6 = vcmp.eq.s32.totalorder %v1291_v23, %v1275_v4  ;;  %v55_v4 = vld [vmem:[%s1521_s0 + $0x148] sm:$0xff] }
 0x105   :  { %v867_v42 = vadd.f32 %v866_v37, %v822_v24  ;;  %v648_v27 = vpop.permute.xlu1 %647  ;;  %v643_v1 = vpop.permute.xlu0 %642 }
 0x106   :  { %v779_v25 = vmul.f32 %v648_v27, %v38_v26  ;;  %v778_v13 = vmul.f32 %v643_v1, %v37_v19  ;;  %v47_v27 = vld [vmem:[%s1521_s0 + $0x108] sm:$0xff] }
 0x107   :  { %v868_v41 = vadd.f32 %v867_v42, %v823_v28  ;;  %v48_v42 = vld [vmem:[%s1521_s0 + $0x110] sm:$0xff] }
 0x108   :  { %v824_v30 = vsel %vm456_vm7, %v778_v13, 0.0  ;;  %v825_v36 = vsel %vm457_vm8, %v779_v25, 0.0  ;;  %vm472_vm7 = vcmp.eq.s32.totalorder %v1291_v23, %v1273_v3  ;;  %vm473_vm8 = vcmp.eq.s32.totalorder %v1291_v23, %v1279_v8 }
 0x109   :  { %v869_v46 = vadd.f32 %v868_v41, %v824_v30  ;;  %v658_v35 = vpop.permute.xlu1 %657  ;;  %v653_v18 = vpop.permute.xlu0 %652  ;;  %v49_v30 = vld [vmem:[%s1521_s0 + $0x118] sm:$0xff] }
 0x10a   :  { %v781_v5 = vmul.f32 %v658_v35, %v40_v31  ;;  %v780_v39 = vmul.f32 %v653_v18, %v39_v32  ;;  %v50_v32 = vld [vmem:[%s1521_s0 + $0x120] sm:$0xff] }
 0x10b   :  { %v870_v45 = vadd.f32 %v869_v46, %v825_v36 }
 0x10c   :  { %v826_v43 = vsel %vm458_vm9, %v780_v39, 0.0  ;;  %v827_v10 = vsel %vm459_vm10, %v781_v5, 0.0  ;;  %vm474_vm9 = vcmp.eq.s32.totalorder %v1291_v23, %v1277_v7  ;;  %vm475_vm10 = vcmp.eq.s32.totalorder %v1291_v23, %v1283_v12 }
 0x10d   :  { %v871_v50 = vadd.f32 %v870_v45, %v826_v43  ;;  %v668_v17 = vpop.permute.xlu1 %667  ;;  %v663_v34 = vpop.permute.xlu0 %662  ;;  %v52_v45 = vld [vmem:[%s1521_s0 + $0x130] sm:$0xff] }
 0x10e   :  { %v783_v44 = vmul.f32 %v668_v17, %v42_v29  ;;  %v782_v47 = vmul.f32 %v663_v34, %v41_v40  ;;  %v51_v29 = vld [vmem:[%s1521_s0 + $0x128] sm:$0xff] }
 0x10f   :  { %v872_v49 = vadd.f32 %v871_v50, %v827_v10 }
 0x110   :  { %v828_v33 = vsel %vm460_vm11, %v782_v47, 0.0  ;;  %v829_v9 = vsel %vm461_vm12, %v783_v44, 0.0  ;;  %v54_v44 = vld [vmem:[%s1521_s0 + $0x140] sm:$0xff]  ;;  %v53_v47 = vld [vmem:[%s1521_s0 + $0x138] sm:$0xff]  ;;  %vm293_vm11 = vcmp.lt.s32.totalorder %v199_v15, 358  ;;  %vm477_vm12 = vcmp.eq.s32.totalorder %v1291_v23, %v1288_v20 }
 0x111   :  { %v873_v54 = vadd.f32 %v872_v49, %v828_v33  ;;  %v678_v51 = vpop.permute.xlu1 %677  ;;  %v673_v2 = vpop.permute.xlu0 %672 }
 0x112   :  { %v785_v38 = vmul.f32 %v678_v51, %v44_v22  ;;  %v784_v52 = vmul.f32 %v673_v2, %v43_v48 }
 0x113   :  { %v874_v53 = vadd.f32 %v873_v54, %v829_v9  ;;  %v56_v9 = vld [vmem:[%s1521_s0 + $0x150] sm:$0xff] }
 0x114   :  { %v830_v6 = vsel %vm462_vm13, %v784_v52, 0.0  ;;  %v831_v26 = vsel %vm463_vm14, %v785_v38, 0.0  ;;  %vm476_vm13 = vcmp.eq.s32.totalorder %v1291_v23, %v1281_v11  ;;  %vm523_vm14 = vmand %vm477_vm12, %vm293_vm11 }
 0x115   :  { %v875_v56 = vadd.f32 %v874_v53, %v830_v6  ;;  %v688_v14 = vpop.permute.xlu1 %687  ;;  %v683_v37 = vpop.permute.xlu0 %682 }
 0x116   :  { %v787_v19 = vmul.f32 %v688_v14, %v46_v21  ;;  %v786_v24 = vmul.f32 %v683_v37, %v45_v16  ;;  %v58_v14 = vld [vmem:[%s1521_s0 + $0x160] sm:$0xff]  ;;  %v57_v37 = vld [vmem:[%s1521_s0 + $0x158] sm:$0xff] }
 0x117   :  { %v876_v55 = vadd.f32 %v875_v56, %v831_v26 }
 0x118   :  { %v832_v1 = vsel %vm464_vm15, %v786_v24, 0.0  ;;  %v833_v13 = vsel %vm465_vm0, %v787_v19, 0.0 }
 0x119   :  { %v877_v58 = vadd.f32 %v876_v55, %v832_v1  ;;  %v698_v28 = vpop.permute.xlu1 %697  ;;  %v693_v25 = vpop.permute.xlu0 %692 }
 0x11a   :  { %v789_v41 = vmul.f32 %v698_v28, %v48_v42  ;;  %v788_v31 = vmul.f32 %v693_v25, %v47_v27 }
 0x11b   :  { %v878_v57 = vadd.f32 %v877_v58, %v833_v13 }
 0x11c   :  { %v834_v46 = vsel %vm466_vm1, %v788_v31, 0.0  ;;  %v835_v36 = vsel %vm467_vm2, %v789_v41, 0.0 }
 0x11d   :  { %v879_v60 = vadd.f32 %v878_v57, %v834_v46  ;;  %v708_v35 = vpop.permute.xlu1 %707  ;;  %v703_v18 = vpop.permute.xlu0 %702 }
 0x11e   :  { %v791_v5 = vmul.f32 %v708_v35, %v50_v32  ;;  %v790_v39 = vmul.f32 %v703_v18, %v49_v30 }
 0x11f   :  { %v880_v59 = vadd.f32 %v879_v60, %v835_v36 }
 0x120   :  { %v836_v40 = vsel %vm468_vm3, %v790_v39, 0.0  ;;  %v837_v17 = vsel %vm469_vm4, %v791_v5, 0.0 }
 0x121   :  { %v881_v62 = vadd.f32 %v880_v59, %v836_v40  ;;  %v718_v43 = vpop.permute.xlu1 %717  ;;  %v713_v50 = vpop.permute.xlu0 %712 }
 0x122   :  { %v793_v34 = vmul.f32 %v718_v43, %v52_v45  ;;  %v792_v10 = vmul.f32 %v713_v50, %v51_v29 }
 0x123   :  { %v882_v61 = vadd.f32 %v881_v62, %v837_v17 }
 0x124   :  { %v838_v49 = vsel %vm470_vm5, %v792_v10, 0.0  ;;  %v839_v54 = vsel %vm471_vm6, %v793_v34, 0.0 }
 0x125   :  { %v883_v22 = vadd.f32 %v882_v61, %v838_v49  ;;  %v728_v48 = vpop.permute.xlu1 %727  ;;  %v723_v33 = vpop.permute.xlu0 %722 }
 0x126   :  { %v795_v63 = vmul.f32 %v728_v48, %v54_v44  ;;  %v794_v51 = vmul.f32 %v723_v33, %v53_v47 }
 0x127   :  { %v884_v2 = vadd.f32 %v883_v22, %v839_v54 }
 0x128   :  { %v840_v38 = vsel %vm472_vm7, %v794_v51, 0.0  ;;  %v841_v16 = vsel %vm473_vm8, %v795_v63, 0.0 }
 0x129   :  { %v885_v52 = vadd.f32 %v884_v2, %v840_v38  ;;  %v738_v53 = vpop.permute.xlu1 %737  ;;  %v733_v21 = vpop.permute.xlu0 %732 }
 0x12a   :  { %v797_v6 = vmul.f32 %v738_v53, %v56_v9  ;;  %v796_v3 = vmul.f32 %v733_v21, %v55_v4 }
 0x12b   :  { %v886_v56 = vadd.f32 %v885_v52, %v841_v16 }
 0x12c   :  { %v842_v8 = vsel %vm474_vm9, %v796_v3, 0.0  ;;  %v843_v7 = vsel %vm475_vm10, %v797_v6, 0.0 }
 0x12d   :  { %v887_v26 = vadd.f32 %v886_v56, %v842_v8  ;;  %v748_v19 = vpop.permute.xlu1 %747  ;;  %v743_v24 = vpop.permute.xlu0 %742 }
 0x12e   :  { %v799_v55 = vmul.f32 %v748_v19, %v58_v14  ;;  %v798_v42 = vmul.f32 %v743_v24, %v57_v37 }
 0x12f   :  { %v888_v27 = vadd.f32 %v887_v26, %v843_v7 }
 0x130   :  { %v844_v1 = vsel %vm476_vm13, %v798_v42, 0.0  ;;  %v845_v28 = vsel %vm523_vm14, %v799_v55, 0.0 }
 0x131   :  { %v889_v58 = vadd.f32 %v888_v27, %v844_v1 }
 0x133   :  { %v890_v25 = vadd.f32 %v889_v58, %v845_v28 }
 0x135   :  { %v892_v12 = vrot.slane %v890_v25, 4 }
 0x137   :  { %v893_v13 = vadd.f32 %v892_v12, %v890_v25 }
 0x139   :  { %v894_v41 = vrot.slane %v893_v13, 2 }
 0x13b   :  { %v895_v31 = vadd.f32 %v894_v41, %v893_v13 }
 0x13d   :  { %v896_v57 = vrot.slane %v895_v31, 1 }
 0x13f   :  { %v897_v32 = vadd.f32 %v896_v57, %v895_v31 }
 0x141   :  { %898 = vst [vmem:[%s1522_s3] sm:$0x1] %v897_v32 }

</bundles_post_ra>
